<compile_context>
chip_gen: v7x
topology: tpu7x:2x2x1
jax: 0.10.0
libtpu: 0.0.40
codegen_flags: <defaults>
</compile_context>

<pallas_src>
import jax
import jax.numpy as jnp
from jax.experimental import pallas as pl
from jax.experimental.pallas import tpu as pltpu

SCALE = 2  # Upsample(scale_factor=2, size=None), mode='nearest'


def _upsample2x_rows_kernel(x_ref, o_ref):
    """x_ref: (rb, W, C) rows of the NHWC view; o_ref: (rb, 2, 2W, C)."""
    x = x_ref[...]                                # (rb, W, C)
    # Width duplication: interleaved repeat along the (second-minor) W axis.
    # The lane axis (C) is untouched, so loads/stores stay full-width.
    y = jnp.repeat(x, SCALE, axis=1)              # (rb, 2W, C)
    # Height duplication expressed in the output index space: two contiguous
    # stores into the (rb, 2, 2W, C) block instead of an interleaving sublane
    # repeat -> only 2x expansion ever lives in vregs.
    o_ref[:, 0, :, :] = y
    o_ref[:, 1, :, :] = y


def _rows_per_block(num_rows, w, c, itemsize,
                    vmem_budget_bytes=8 * 1024 * 1024, min_grid=2):
    """Largest divisor of num_rows whose double-buffered (in + 4x out) footprint
    fits the VMEM budget, preferring a grid of >= min_grid steps (v7x: 2 TCs)."""
    per_row = 2 * (w * c + SCALE * SCALE * w * c) * itemsize   # 2 bufs x (in + out)
    max_rb = max(1, vmem_budget_bytes // per_row)
    best = 1
    for d in range(1, num_rows + 1):
        if num_rows % d == 0 and d <= max_rb and (num_rows // d) >= min_grid:
            best = d
    return best


def upsample_nearest2x(x, *, vmem_budget_bytes=8 * 1024 * 1024):
    """(N, C, H, W) -> (N, C, 2H, 2W), nearest mode.

    Matches torch.nn.functional.interpolate(x, scale_factor=2, mode='nearest').
    """
    N, C, H, W = x.shape
    itemsize = jnp.dtype(x.dtype).itemsize

    # NHWC-style working layout: channels in the lane dim -> lane-dense blocks.
    # The transposes are wrapper-side layout plumbing; in a fused ResnetG the
    # NHWC layout would be carried end-to-end.
    xr = jnp.transpose(x, (0, 2, 3, 1)).reshape(N * H, W, C)   # (rows, W, C)

    rb = _rows_per_block(N * H, W, C, itemsize,
                         vmem_budget_bytes=vmem_budget_bytes)
    grid = (N * H // rb,)

    out = pl.pallas_call(
        _upsample2x_rows_kernel,
        out_shape=jax.ShapeDtypeStruct((N * H, SCALE, SCALE * W, C), x.dtype),
        grid=grid,
        in_specs=[pl.BlockSpec((rb, W, C), lambda i: (i, 0, 0))],
        out_specs=pl.BlockSpec((rb, SCALE, SCALE * W, C),
                               lambda i: (i, 0, 0, 0)),
        compiler_params=pltpu.CompilerParams(
            dimension_semantics=("parallel",)),
    )(xr)

    # (N*H, 2, 2W, C) is row-major-identical to NHWC (N, 2H, 2W, C): free reshape.
    out = out.reshape(N, SCALE * H, SCALE * W, C)
    return jnp.transpose(out, (0, 3, 1, 2))                    # back to NCHW


if __name__ == "__main__":
    key = jax.random.PRNGKey(0)
    # Feature map entering an Upsample inside ResnetG(ndf=128): (batch, ndf, H, W).
    # Channels land in the lane dimension of the kernel's working layout.
    N, C, H, W = 2, 128, 8, 8
    x = jax.random.normal(key, (N, C, H, W), dtype=jnp.float32)

    y = jax.block_until_ready(upsample_nearest2x(x))

    # Reference: same semantics as nnf.interpolate(mode='nearest', scale_factor=2).
    ref = jnp.repeat(jnp.repeat(x, SCALE, axis=2), SCALE, axis=3)

    assert y.shape == (N, C, SCALE * H, SCALE * W), y.shape
    assert y.dtype == x.dtype
    assert jnp.array_equal(y, ref), "mismatch vs reference nearest upsample"
    print("KERNEL_OK")
</pallas_src>

<mosaic_0001>
module attributes {stable_mosaic.version = 11 : i64} {
  func.func @_upsample2x_rows_kernel(%arg0: i32, %arg1: memref<8x8x128xf32, #tpu.memory_space<vmem>>, %arg2: memref<8x2x16x128xf32, #tpu.memory_space<vmem>>) attributes {dimension_semantics = [#tpu.dimension_semantics<parallel>], iteration_bounds = array<i64: 2>, scalar_prefetch = 0 : i64, scratch_operands = 0 : i64, tpu.core_type = #tpu.core_type<tc>, window_params = [{transform_indices = @transform_0, window_bounds = array<i64: 8, 8, 128>}, {transform_indices = @transform_1, window_bounds = array<i64: 8, 2, 16, 128>}]} {
    %c0 = arith.constant 0 : index
    %c0_0 = arith.constant 0 : index
    %c0_1 = arith.constant 0 : index
    %0 = vector.load %arg1[%c0, %c0_0, %c0_1] : memref<8x8x128xf32, #tpu.memory_space<vmem>>, vector<8x8x128xf32>
    %1 = vector.shape_cast %0 : vector<8x8x128xf32> to vector<8x8x1x128xf32>
    %2 = vector.broadcast %1 : vector<8x8x1x128xf32> to vector<8x8x2x128xf32>
    %3 = vector.shape_cast %2 : vector<8x8x2x128xf32> to vector<8x16x128xf32>
    %c0_2 = arith.constant 0 : index
    %c0_3 = arith.constant 0 : index
    %c0_4 = arith.constant 0 : index
    %c0_5 = arith.constant 0 : index
    %4 = vector.load %arg2[%c0_2, %c0_3, %c0_4, %c0_5] : memref<8x2x16x128xf32, #tpu.memory_space<vmem>>, vector<8x1x16x128xf32>
    %5 = vector.shape_cast %4 : vector<8x1x16x128xf32> to vector<8x16x128xf32>
    %6 = vector.shape_cast %3 : vector<8x16x128xf32> to vector<8x1x16x128xf32>
    tpu.vector_store %arg2[%c0_2, %c0_3, %c0_4, %c0_5], %6 {strides = array<i32>} : memref<8x2x16x128xf32, #tpu.memory_space<vmem>>, vector<8x1x16x128xf32>,
    %c0_6 = arith.constant 0 : index
    %c1 = arith.constant 1 : index
    %c0_7 = arith.constant 0 : index
    %c0_8 = arith.constant 0 : index
    %7 = vector.load %arg2[%c0_6, %c1, %c0_7, %c0_8] : memref<8x2x16x128xf32, #tpu.memory_space<vmem>>, vector<8x1x16x128xf32>
    %8 = vector.shape_cast %7 : vector<8x1x16x128xf32> to vector<8x16x128xf32>
    %9 = vector.shape_cast %3 : vector<8x16x128xf32> to vector<8x1x16x128xf32>
    tpu.vector_store %arg2[%c0_6, %c1, %c0_7, %c0_8], %9 {strides = array<i32>} : memref<8x2x16x128xf32, #tpu.memory_space<vmem>>, vector<8x1x16x128xf32>,
    return
  }
  func.func @transform_0(%arg0: i32) -> (i32, i32, i32) {
    %c0_i32 = arith.constant 0 : i32
    %c0_i32_0 = arith.constant 0 : i32
    %c0_i32_1 = arith.constant 0 : i32
    return %arg0, %c0_i32, %c0_i32_0 : i32, i32, i32
  }
  func.func @transform_1(%arg0: i32) -> (i32, i32, i32, i32) {
    %c0_i32 = arith.constant 0 : i32
    %c0_i32_0 = arith.constant 0 : i32
    %c0_i32_1 = arith.constant 0 : i32
    %c0_i32_2 = arith.constant 0 : i32
    return %arg0, %c0_i32, %c0_i32_0, %c0_i32_1 : i32, i32, i32, i32
  }
}

</mosaic_0001>

<bundles_post_ra>
// kernel: tpu_custom_call.1
= control target key start
LH: loop header
LB: loop body
LE: loop exit
PB: predicated region body
PF: predicated region fallthrough
CT: control target
= control target key end

     0   :  { %6 = vsyncpa [#allocation3], 0  ;;  %s1804_s0 = inlined_call_operand.hbm [shape: f32[16,8,128], index: 0, kind: input, shape index: {}]   ;;  %s1805_s1 = inlined_call_operand.hbm [shape: f32[16,2,16,128], index: 1, kind: output, shape index: {}]  }
   0x1   :  { %8 = vsyncpa [#allocation3 + $0x1], 0 }
   0x2   :  { %9 = vsyncpa [#allocation4], 0 }
   0x3   :  { %11 = vsyncpa [#allocation4 + $0x1], 0  ;;  %s1420_s6 = smov 0   ;;  %s1422_s7 = smov 0  }
   0x4   :  { %s1424_s8 = smov 0   ;;  %s1426_s9 = smov 0  }
   0x5 LB: > { %s1441_s10 = sadd.s32 4294967295, %s1400_s9   ;;  %s1210_s11 = sadd.s32 4294967294, %s1400_s9   ;;  %s1400_s9 = sphi %s1426_s9, %s1818_s9   ;;  %s1396_s8 = sphi %s1424_s8, %s1817_s8   ;;  %s1392_s7 = sphi %s1422_s7, %s1816_s7   ;;  %s1388_s6 = sphi %s1420_s6, %s1815_s6  }
   0x6   : > { %s1445_s12 = sadd.s32 1, %s1400_s9   ;;  %s24_s13 = sadd.s32 1, %s1396_s8 }
   0x7   : > { %s21_s14 = ssub.s32 %s1400_s9, %s1445_s12  ;;  %p31_p0 = scmp.ne.s32.totalorder %s1396_s8, %s1392_s7 }
   0x8   : > { %p22_p1 = scmp.eq.s32.totalorder %s21_s14, 0  ;;  %p32_p2 = scmp.eq.s32.totalorder %s1400_s9, 0 }
   0x9   : > { %p37_p3 = scmp.ne.s32.totalorder %s1392_s7, %s1388_s6  ;;  %p38_p4 = scmp.eq.s32.totalorder %s1441_s10, 0 }
   0xa   : > { %s1457_s15 = scalar_select %p22_p1, %s1396_s8, %s24_s13  }
   0xb   : > { %p1459_p5 = por %p32_p2, %p31_p0  ;;  %p1463_p6 = por %p38_p4, %p37_p3 }
   0xc   : > { %p61_p7 = scmp.eq.s32.totalorder %s1441_s10, 1  ;;  %p67_p8 = scmp.eq.s32.totalorder %s1210_s11, 1 }
   0xd   : > { %p1256_p10 = scmp.lt.s32.totalorder %s1400_s9, 2  ;;  %s87_s20 = sand.u32 1, %s1396_s8  }
   0xe   : > { %p1470_p11 = por %p61_p7, %p31_p0  ;;  %p1474_p12 = por %p67_p8, %p37_p3 }
   0xf   : > { %s1241_s21 = sshll.u32 %s1400_s9, 10  ;;  %s1213_s22 = sshll.u32 %s87_s20, 6 }
  0x10   : > { %s1809_s18 = scalar_select %p1470_p11, 1, 0 }
  0x11   : > { %s1810_s19 = scalar_select %p1474_p12, 1, 0 }
  0x12   : > { %s1483_s25 = scalar_lea.hbm %s1804_s0, %s1241_s21  ;;  %s91_s26 = scalar_lea.vmem [#allocation2], %s1213_s22 }
  0x13   : > { %s98_s27 = sshll.u32 %s91_s26, 4  ;;  %p1487_p13 = pnand %p1256_p10, %p1459_p5  ;;  %s1491_s27 = int_to_ptr.vmem [resolvable:$true] %s98_s27 }
  0x14   : > { %s1493_s29 = scalar_lea.sflag [#allocation3], %s87_s20  ;;  %s1304_s30 = scalar_lea.hbm %s1483_s25, 1024 }
  0x15   : > { %p1305_p0 = scmp.ne.s32.totalorder %s1483_s25, %s1304_s30  ;;  %p1306_p1 = pneg %p1487_p13 }
  0x16   : > { %s1309_s4 = scalar_lea.hbm %s1804_s0, 2048  ;;  %p1310_p4 = scmp.lt.u32.totalorder %s1483_s25, %s1804_s0 }
  0x17   : > { %p1307_p2 = pnand %p1306_p1, %p1305_p0  ;;  %p1311_p5 = scmp.lt.u32.totalorder %s1309_s4, %s1304_s30 }
  0x18   : > { %p1313_p8 = scmp.lt.u32.totalorder %s1304_s30, %s1483_s25 }
  0x19   : > { %p1308_p3 = pneg %p1307_p2  ;;  %p1312_p7 = por %p1311_p5, %p1310_p4 }
  0x1b   : > { %p1314_p10 = por %p1313_p8, %p1312_p7 }
  0x1d   : > { %p1315_p9 = pnand %p1314_p10, %p1308_p3 }
  0x1f   : > { %1318 = shalt.err (!%p1315_p9)
}
  0x20   : > { %s1319_s13 = scalar_lea.vmem %s1491_s27, 1024  ;;  %s1402_s14 = smov [#allocation2]  }
  0x21   : > { %p1320_p0 = scmp.ne.s32.totalorder %s1491_s27, %s1319_s13  ;;  %s1324_s16 = sshll.u32 %s1402_s14, 4  ;;  %s1325_s16 = int_to_ptr.vmem [resolvable:$false] %s1324_s16 }
  0x22   : > { %s1326_s20 = scalar_lea.vmem %s1325_s16, 2048  ;;  %p1327_p11 = scmp.lt.s32.totalorder %s1491_s27, %s1325_s16 }
  0x23   : > { %p1322_p2 = pnand %p1320_p0, %p1306_p1  ;;  %p1328_p4 = scmp.lt.s32.totalorder %s1326_s20, %s1319_s13 }
  0x25   : > { %p1323_p12 = pneg %p1322_p2  ;;  %p1329_p5 = por %p1328_p4, %p1327_p11 }
  0x27   : > { %p1330_p7 = pnand %p1329_p5, %p1323_p12 }
  0x29   : > { %1333 = shalt.err (!%p1330_p7)
}
  0x2a   : > { %s1403_s21 = smov 128   ;;  %s1404_s22 = smov 8  }
  0x2b   : > { %1251 = dma.hbm_to_vmem [thread:$0]  (!%p1487_p13), %s1483_s25, 1024, %s1491_s27, %s1493_s29, %s1403_s21, %s1403_s21, %s1404_s22  }
  0x2c   : > { %p1216_p9 = scmp.ge.s32.totalorder %s1400_s9, 1  ;;  %p106_p1 = scmp.lt.s32.totalorder %s1400_s9, 3 }
  0x2e   : > { %p107_p3 = pnand %p1216_p9, %p106_p1 }
  0x2f   : > { %s1524_s23 = sand.u32 (!%p107_p3), 1, %s1392_s7  }
  0x30   : > { %110 = sbr.rel (%p107_p3) target bundleno = 150 (0x96), region = 24  ;;  %s1217_s24 = sshll.u32 (!%p107_p3), %s1524_s23, 6 }
  0x31   : > { %s113_s26 = scalar_lea.sflag (!%p107_p3), [#allocation3], %s1524_s23  ;;  %s1528_s30 = scalar_lea.vmem (!%p107_p3), [#allocation2], %s1217_s24 }
  0x37   : > { %1379 = dma.done.wait (%p1463_p6), %s113_s26, 1024  }
  0x38   : > { %1381 = vsyncadd (%p1463_p6), %s113_s26, 4294966272  ;;  %v157_v0 = vlaneseq  ;;  %v1405_v1 = vmov 1966171168   ;;  %v1406_v3 = vmov 1983009808   ;;  %v137_v9 = vld [vmem:[%s1528_s30] sm:$0xff] }
  0x39   : > { %v155_v2 = vunpack.c.l.s4 %v1405_v1  ;;  %v804_v4 = vunpack.c.l.s4 %v1406_v3  ;;  %v138_v12 = vld [vmem:[%s1528_s30 + $0x8] sm:$0xff]  ;;  %v1543_v13 = vld [vmem:[%s1528_s30 + $0x10] sm:$0xff]  ;;  %v153_v15 = vcombine.high %v137_v9, %v137_v9  ;;  %v1548_v18 = vld [vmem:[%s1528_s30 + $0x18] sm:$0xff]  ;;  %s1218_s17 = sshll.u32 %s1524_s23, 8  ;;  %s1243_s27 = sshll.u32 %s1441_s10, 12 }
  0x3a   : > { %v158_v5 = vshrl.u32 %v157_v0, 7  ;;  %v202_v17 = vcombine.high %v138_v12, %v138_v12  ;;  %v251_v20 = vcombine.high %v1543_v13, %v1543_v13  ;;  %v300_v22 = vcombine.high %v1548_v18, %v1548_v18  ;;  %s1598_s25 = scalar_lea.vmem [#allocation5], %s1218_s17  ;;  %s1756_s3 = scalar_lea.hbm %s1805_s1, %s1243_s27 }
  0x3b   : > { %v156_v6 = vunpack.c.0.s8 %v155_v2  ;;  %v805_v7 = vunpack.c.0.s8 %v804_v4  ;;  %s1137_s28 = sshll.u32 %s1598_s25, 4  ;;  %s1123_s10 = scalar_lea.sflag [#allocation4], %s1524_s23  ;;  %s1758_s28 = int_to_ptr.vmem [resolvable:$true] %s1137_s28 }
  0x3c   : > { %v1537_v10 = vsub.s32 0, %v158_v5  ;;  %s1334_s4 = scalar_lea.vmem %s1758_s28, 4096  ;;  %p1812_p11 = scmp.ne.s32.totalorder %s1809_s18, 0 }
  0x3d   : > { %v1534_v8 = vsub.s32 %v156_v6, %v158_v5  ;;  %v1539_v11 = vsub.s32 %v805_v7, %v158_v5  ;;  %p1335_p6 = scmp.ne.s32.totalorder %s1758_s28, %s1334_s4  ;;  %s1407_s5 = smov [#allocation5]  }
  0x3e   : > { %s1338_s11 = sshll.u32 %s1407_s5, 4  ;;  %s1339_s11 = int_to_ptr.vmem [resolvable:$false] %s1338_s11 }
  0x3f   : > { %v160_v14 = vrot.slane %v137_v9, %v1534_v8  ;;  %v209_v16 = vrot.slane %v138_v12, %v1534_v8  ;;  %v258_v19 = vrot.slane %v1543_v13, %v1534_v8  ;;  %v1556_v21 = vrot.slane %v1548_v18, %v1534_v8  ;;  %p1336_p12 = pnand %p1335_p6, %p1812_p11  ;;  %s1340_s13 = scalar_lea.vmem %s1339_s11, 8192 }
  0x40   : > { %v167_v25 = vrot.slane %v153_v15, %v1534_v8  ;;  %v216_v28 = vrot.slane %v202_v17, %v1534_v8  ;;  %p1341_p8 = scmp.lt.s32.totalorder %s1758_s28, %s1339_s11  ;;  %p1342_p10 = scmp.lt.s32.totalorder %s1340_s13, %s1334_s4 }
  0x41   : > { %v168_v23 = vcombine.high %v160_v14, %v160_v14  ;;  %v176_v24 = vrot.slane %v160_v14, %v1534_v8  ;;  %v217_v26 = vcombine.high %v209_v16, %v209_v16  ;;  %v225_v27 = vrot.slane %v209_v16, %v1534_v8  ;;  %p1337_p13 = pneg %p1336_p12 }
  0x42   : > { %v266_v29 = vcombine.high %v258_v19, %v258_v19  ;;  %v1565_v30 = vrot.slane %v258_v19, %v1534_v8  ;;  %v169_v34 = vcombine.high %v167_v25, %v167_v25  ;;  %v183_v35 = vrot.slane %v167_v25, %v1534_v8  ;;  %p1343_p0 = por %p1342_p10, %p1341_p8 }
  0x43   : > { %v190_v31 = vrot.slane %v168_v23, %v1534_v8  ;;  %v198_v32 = vcombine.high %v176_v24, %v176_v24  ;;  %v548_v33 = vrot.slane %v176_v24, %v1537_v10  ;;  %v239_v36 = vrot.slane %v217_v26, %v1534_v8 }
  0x44   : > { %v247_v37 = vcombine.high %v225_v27, %v225_v27  ;;  %v580_v38 = vrot.slane %v225_v27, %v1537_v10  ;;  %v197_v42 = vrot.slane %v169_v34, %v1534_v8  ;;  %v199_v43 = vcombine.high %v183_v35, %v183_v35  ;;  %p1344_p2 = pnand %p1343_p0, %p1337_p13 }
  0x45   : > { %v200_v39 = vcombine.high %v190_v31, %v190_v31  ;;  %v552_v40 = vrot.slane %v190_v31, %v1537_v10  ;;  %v556_v41 = vrot.slane %v198_v32, %v1537_v10  ;;  %v564_v44 = vrot.slane %v183_v35, %v1537_v10 }
  0x46   : > { %v249_v45 = vcombine.high %v239_v36, %v239_v36  ;;  %v584_v46 = vrot.slane %v239_v36, %v1537_v10  ;;  %v201_v49 = vcombine.high %v197_v42, %v197_v42  ;;  %v568_v50 = vrot.slane %v197_v42, %v1537_v10 }
  0x47   : > { %v560_v47 = vrot.slane %v200_v39, %v1537_v10  ;;  %v801_v48 = vcombine.low %v548_v33, %v552_v40  ;;  %v572_v51 = vrot.slane %v199_v43, %v1537_v10  ;;  %v588_v52 = vrot.slane %v247_v37, %v1537_v10 }
  0x48   : > { %v592_v53 = vrot.slane %v249_v45, %v1537_v10  ;;  %v835_v54 = vcombine.low %v580_v38, %v584_v46  ;;  %v576_v57 = vrot.slane %v201_v49, %v1537_v10  ;;  %v818_v58 = vcombine.low %v564_v44, %v568_v50  ;;  %v141_v50 = vld [vmem:[%s1528_s30 + $0x20] sm:$0xff] }
  0x49   : > { %v802_v55 = vcombine.low %v556_v41, %v560_v47  ;;  %v809_v56 = vrot.slane %v801_v48, %v1539_v11  ;;  %v218_v61 = vcombine.high %v216_v28, %v216_v28  ;;  %v232_v62 = vrot.slane %v216_v28, %v1534_v8 }
  0x4a   : > { %v836_v59 = vcombine.low %v588_v52, %v592_v53  ;;  %v843_v60 = vrot.slane %v835_v54, %v1539_v11  ;;  %v819_v0 = vcombine.low %v572_v51, %v576_v57  ;;  %v826_v1 = vrot.slane %v818_v58, %v1539_v11 }
  0x4b   : > { %v816_v63 = vrot.slane %v802_v55, %v1539_v11  ;;  %v288_v2 = vrot.slane %v266_v29, %v1534_v8  ;;  %v246_v4 = vrot.slane %v218_v61, %v1534_v8  ;;  %v248_v5 = vcombine.high %v232_v62, %v232_v62 }
  0x4c   : > { %v850_v3 = vrot.slane %v836_v59, %v1539_v11  ;;  %v596_v6 = vrot.slane %v232_v62, %v1537_v10  ;;  %v833_v9 = vrot.slane %v819_v0, %v1539_v11  ;;  %v296_v12 = vcombine.high %v1565_v30, %v1565_v30 }
  0x4d   : > { %v817_v7 = vcombine.low %v809_v56, %v816_v63  ;;  %v298_v14 = vcombine.high %v288_v2, %v288_v2  ;;  %v250_v16 = vcombine.high %v246_v4, %v246_v4  ;;  %v600_v17 = vrot.slane %v246_v4, %v1537_v10 }
  0x4e   : > { %v851_v15 = vcombine.low %v843_v60, %v850_v3  ;;  %v604_v19 = vrot.slane %v248_v5, %v1537_v10  ;;  %v834_v23 = vcombine.low %v826_v1, %v833_v9  ;;  %v612_v24 = vrot.slane %v1565_v30, %v1537_v10 }
  0x4f   : > { %1089 = vst [vmem:[%s1598_s25] sm:$0xff] %v817_v7  ;;  %1219 = vst [vmem:[%s1598_s25 + $0x10] sm:$0xff] %v817_v7  ;;  %v616_v25 = vrot.slane %v288_v2, %v1537_v10  ;;  %v620_v26 = vrot.slane %v296_v12, %v1537_v10  ;;  %v608_v27 = vrot.slane %v250_v16, %v1537_v10 }
  0x50   : > { %1091 = vst [vmem:[%s1598_s25 + $0x20] sm:$0xff] %v851_v15  ;;  %1221 = vst [vmem:[%s1598_s25 + $0x30] sm:$0xff] %v851_v15  ;;  %v852_v28 = vcombine.low %v596_v6, %v600_v17  ;;  %v624_v29 = vrot.slane %v298_v14, %v1537_v10  ;;  %v265_v31 = vrot.slane %v251_v20, %v1534_v8 }
  0x51   : > { %1090 = vst [vmem:[%s1598_s25 + $0x8] sm:$0xff] %v834_v23  ;;  %1220 = vst [vmem:[%s1598_s25 + $0x18] sm:$0xff] %v834_v23  ;;  %v869_v32 = vcombine.low %v612_v24, %v616_v25  ;;  %v315_v30 = vcombine.high %v1556_v21, %v1556_v21  ;;  %v323_v33 = vrot.slane %v1556_v21, %v1534_v8 }
  0x52   : > { %v314_v34 = vrot.slane %v300_v22, %v1534_v8  ;;  %v853_v35 = vcombine.low %v604_v19, %v608_v27  ;;  %v860_v36 = vrot.slane %v852_v28, %v1539_v11  ;;  %v870_v37 = vcombine.low %v620_v26, %v624_v29  ;;  %v142_v27 = vld [vmem:[%s1528_s30 + $0x28] sm:$0xff] }
  0x53   : > { %v267_v13 = vcombine.high %v265_v31, %v265_v31  ;;  %v877_v20 = vrot.slane %v869_v32, %v1539_v11  ;;  %v281_v38 = vrot.slane %v265_v31, %v1534_v8  ;;  %v337_v39 = vrot.slane %v315_v30, %v1534_v8 }
  0x54   : > { %v345_v40 = vcombine.high %v323_v33, %v323_v33  ;;  %v867_v21 = vrot.slane %v853_v35, %v1539_v11  ;;  %v884_v41 = vrot.slane %v870_v37, %v1539_v11  ;;  %v644_v22 = vrot.slane %v323_v33, %v1537_v10 }
  0x55   : > { %v295_v18 = vrot.slane %v267_v13, %v1534_v8  ;;  %v297_v42 = vcombine.high %v281_v38, %v281_v38  ;;  %v628_v43 = vrot.slane %v281_v38, %v1537_v10  ;;  %v347_v44 = vcombine.high %v337_v39, %v337_v39 }
  0x56   : > { %v648_v45 = vrot.slane %v337_v39, %v1537_v10  ;;  %v868_v46 = vcombine.low %v860_v36, %v867_v21  ;;  %v885_v47 = vcombine.low %v877_v20, %v884_v41  ;;  %v652_v52 = vrot.slane %v345_v40, %v1537_v10 }
  0x57   : > { %v299_v48 = vcombine.high %v295_v18, %v295_v18  ;;  %v632_v49 = vrot.slane %v295_v18, %v1537_v10  ;;  %v636_v51 = vrot.slane %v297_v42, %v1537_v10  ;;  %v656_v53 = vrot.slane %v347_v44, %v1537_v10 }
  0x58   : > { %v903_v54 = vcombine.low %v644_v22, %v648_v45  ;;  %1092 = vst [vmem:[%s1598_s25 + $0x28] sm:$0xff] %v868_v46  ;;  %1222 = vst [vmem:[%s1598_s25 + $0x38] sm:$0xff] %v868_v46  ;;  %v316_v57 = vcombine.high %v314_v34, %v314_v34  ;;  %v330_v58 = vrot.slane %v314_v34, %v1534_v8 }
  0x59   : > { %1093 = vst [vmem:[%s1598_s25 + $0x40] sm:$0xff] %v885_v47  ;;  %1223 = vst [vmem:[%s1598_s25 + $0x50] sm:$0xff] %v885_v47  ;;  %v640_v55 = vrot.slane %v299_v48, %v1537_v10  ;;  %v886_v56 = vcombine.low %v628_v43, %v632_v49  ;;  %v904_v59 = vcombine.low %v652_v52, %v656_v53 }
  0x5a   : > { %v911_v60 = vrot.slane %v903_v54, %v1539_v11  ;;  %v356_v61 = vrot.slane %v141_v50, %v1534_v8  ;;  %v349_v62 = vcombine.high %v141_v50, %v141_v50  ;;  %v344_v1 = vrot.slane %v316_v57, %v1534_v8 }
  0x5b   : > { %v887_v63 = vcombine.low %v636_v51, %v640_v55  ;;  %v894_v0 = vrot.slane %v886_v56, %v1539_v11  ;;  %v346_v2 = vcombine.high %v330_v58, %v330_v58  ;;  %v918_v3 = vrot.slane %v904_v59, %v1539_v11  ;;  %v143_v51 = vld [vmem:[%s1528_s30 + $0x30] sm:$0xff] }
  0x5c   : > { %v660_v4 = vrot.slane %v330_v58, %v1537_v10  ;;  %v364_v5 = vcombine.high %v356_v61, %v356_v61  ;;  %v372_v6 = vrot.slane %v356_v61, %v1534_v8  ;;  %v348_v9 = vcombine.high %v344_v1, %v344_v1 }
  0x5d   : > { %v901_v7 = vrot.slane %v887_v63, %v1539_v11  ;;  %v664_v12 = vrot.slane %v344_v1, %v1537_v10  ;;  %v668_v14 = vrot.slane %v346_v2, %v1537_v10  ;;  %v919_v15 = vcombine.low %v911_v60, %v918_v3 }
  0x5e   : > { %v386_v16 = vrot.slane %v364_v5, %v1534_v8  ;;  %v394_v17 = vcombine.high %v372_v6, %v372_v6  ;;  %v676_v19 = vrot.slane %v372_v6, %v1537_v10  ;;  %v672_v24 = vrot.slane %v348_v9, %v1537_v10 }
  0x5f   : > { %v902_v23 = vcombine.low %v894_v0, %v901_v7  ;;  %v920_v25 = vcombine.low %v660_v4, %v664_v12  ;;  %v363_v26 = vrot.slane %v349_v62, %v1534_v8  ;;  %1095 = vst [vmem:[%s1598_s25 + $0x60] sm:$0xff] %v919_v15  ;;  %1225 = vst [vmem:[%s1598_s25 + $0x70] sm:$0xff] %v919_v15 }
  0x60   : > { %v396_v28 = vcombine.high %v386_v16, %v386_v16  ;;  %v680_v29 = vrot.slane %v386_v16, %v1537_v10  ;;  %v684_v31 = vrot.slane %v394_v17, %v1537_v10  ;;  %v405_v32 = vrot.slane %v142_v27, %v1534_v8 }
  0x61   : > { %1094 = vst [vmem:[%s1598_s25 + $0x48] sm:$0xff] %v902_v23  ;;  %1224 = vst [vmem:[%s1598_s25 + $0x58] sm:$0xff] %v902_v23  ;;  %v921_v30 = vcombine.low %v668_v14, %v672_v24  ;;  %v928_v33 = vrot.slane %v920_v25, %v1539_v11  ;;  %v365_v34 = vcombine.high %v363_v26, %v363_v26 }
  0x62   : > { %v379_v35 = vrot.slane %v363_v26, %v1534_v8  ;;  %v688_v36 = vrot.slane %v396_v28, %v1537_v10  ;;  %v937_v37 = vcombine.low %v676_v19, %v680_v29  ;;  %v413_v13 = vcombine.high %v405_v32, %v405_v32  ;;  %v144_v28 = vld [vmem:[%s1528_s30 + $0x38] sm:$0xff] }
  0x63   : > { %v421_v20 = vrot.slane %v405_v32, %v1534_v8  ;;  %v935_v38 = vrot.slane %v921_v30, %v1539_v11  ;;  %v393_v39 = vrot.slane %v365_v34, %v1534_v8  ;;  %v398_v55 = vcombine.high %v142_v27, %v142_v27 }
  0x64   : > { %v395_v40 = vcombine.high %v379_v35, %v379_v35  ;;  %v692_v21 = vrot.slane %v379_v35, %v1537_v10  ;;  %v938_v41 = vcombine.low %v684_v31, %v688_v36  ;;  %v945_v18 = vrot.slane %v937_v37, %v1539_v11 }
  0x65   : > { %v435_v22 = vrot.slane %v413_v13, %v1534_v8  ;;  %v443_v42 = vcombine.high %v421_v20, %v421_v20  ;;  %v936_v43 = vcombine.low %v928_v33, %v935_v38  ;;  %v397_v44 = vcombine.high %v393_v39, %v393_v39 }
  0x66   : > { %v696_v45 = vrot.slane %v393_v39, %v1537_v10  ;;  %v700_v46 = vrot.slane %v395_v40, %v1537_v10  ;;  %v952_v47 = vrot.slane %v938_v41, %v1539_v11  ;;  %v708_v49 = vrot.slane %v421_v20, %v1537_v10 }
  0x67   : > { %v445_v48 = vcombine.high %v435_v22, %v435_v22  ;;  %v712_v50 = vrot.slane %v435_v22, %v1537_v10  ;;  %1096 = vst [vmem:[%s1598_s25 + $0x68] sm:$0xff] %v936_v43  ;;  %1226 = vst [vmem:[%s1598_s25 + $0x78] sm:$0xff] %v936_v43  ;;  %v704_v52 = vrot.slane %v397_v44, %v1537_v10 }
  0x68   : > { %v954_v53 = vcombine.low %v692_v21, %v696_v45  ;;  %v716_v54 = vrot.slane %v443_v42, %v1537_v10  ;;  %v953_v56 = vcombine.low %v945_v18, %v952_v47  ;;  %v454_v59 = vrot.slane %v143_v51, %v1534_v8 }
  0x69   : > { %v720_v57 = vrot.slane %v445_v48, %v1537_v10  ;;  %v971_v58 = vcombine.low %v708_v49, %v712_v50  ;;  %v955_v60 = vcombine.low %v700_v46, %v704_v52  ;;  %v412_v62 = vrot.slane %v398_v55, %v1534_v8 }
  0x6a   : > { %v962_v61 = vrot.slane %v954_v53, %v1539_v11  ;;  %v447_v63 = vcombine.high %v143_v51, %v143_v51  ;;  %1097 = vst [vmem:[%s1598_s25 + $0x80] sm:$0xff] %v953_v56  ;;  %1227 = vst [vmem:[%s1598_s25 + $0x90] sm:$0xff] %v953_v56  ;;  %v462_v2 = vcombine.high %v454_v59, %v454_v59 }
  0x6b   : > { %v972_v0 = vcombine.low %v716_v54, %v720_v57  ;;  %v979_v1 = vrot.slane %v971_v58, %v1539_v11  ;;  %v470_v3 = vrot.slane %v454_v59, %v1534_v8  ;;  %v969_v4 = vrot.slane %v955_v60, %v1539_v11 }
  0x6c   : > { %v414_v5 = vcombine.high %v412_v62, %v412_v62  ;;  %v428_v6 = vrot.slane %v412_v62, %v1534_v8  ;;  %v461_v7 = vrot.slane %v447_v63, %v1534_v8  ;;  %v484_v12 = vrot.slane %v462_v2, %v1534_v8 }
  0x6d   : > { %v986_v9 = vrot.slane %v972_v0, %v1539_v11  ;;  %v492_v14 = vcombine.high %v470_v3, %v470_v3  ;;  %v740_v15 = vrot.slane %v470_v3, %v1537_v10  ;;  %v970_v16 = vcombine.low %v962_v61, %v969_v4 }
  0x6e   : > { %v442_v17 = vrot.slane %v414_v5, %v1534_v8  ;;  %v444_v19 = vcombine.high %v428_v6, %v428_v6  ;;  %v724_v23 = vrot.slane %v428_v6, %v1537_v10  ;;  %v494_v25 = vcombine.high %v484_v12, %v484_v12 }
  0x6f   : > { %v987_v24 = vcombine.low %v979_v1, %v986_v9  ;;  %v744_v26 = vrot.slane %v484_v12, %v1537_v10  ;;  %v748_v27 = vrot.slane %v492_v14, %v1537_v10  ;;  %1098 = vst [vmem:[%s1598_s25 + $0x88] sm:$0xff] %v970_v16  ;;  %1228 = vst [vmem:[%s1598_s25 + $0x98] sm:$0xff] %v970_v16 }
  0x70   : > { %v446_v29 = vcombine.high %v442_v17, %v442_v17  ;;  %v728_v31 = vrot.slane %v442_v17, %v1537_v10  ;;  %v732_v32 = vrot.slane %v444_v19, %v1537_v10  ;;  %v463_v30 = vcombine.high %v461_v7, %v461_v7 }
  0x71   : > { %1099 = vst [vmem:[%s1598_s25 + $0xa0] sm:$0xff] %v987_v24  ;;  %1229 = vst [vmem:[%s1598_s25 + $0xb0] sm:$0xff] %v987_v24  ;;  %v752_v33 = vrot.slane %v494_v25, %v1537_v10  ;;  %v1005_v34 = vcombine.low %v740_v15, %v744_v26  ;;  %v477_v35 = vrot.slane %v461_v7, %v1534_v8 }
  0x72   : > { %v503_v36 = vrot.slane %v144_v28, %v1534_v8  ;;  %v736_v37 = vrot.slane %v446_v29, %v1537_v10  ;;  %v988_v13 = vcombine.low %v724_v23, %v728_v31  ;;  %v491_v20 = vrot.slane %v463_v30, %v1534_v8 }
  0x73   : > { %v496_v38 = vcombine.high %v144_v28, %v144_v28  ;;  %v1006_v39 = vcombine.low %v748_v27, %v752_v33  ;;  %v1013_v40 = vrot.slane %v1005_v34, %v1539_v11  ;;  %v493_v21 = vcombine.high %v477_v35, %v477_v35 }
  0x74   : > { %v756_v41 = vrot.slane %v477_v35, %v1537_v10  ;;  %v989_v18 = vcombine.low %v732_v32, %v736_v37  ;;  %v996_v22 = vrot.slane %v988_v13, %v1539_v11  ;;  %v495_v42 = vcombine.high %v491_v20, %v491_v20 }
  0x75   : > { %v760_v43 = vrot.slane %v491_v20, %v1537_v10  ;;  %v1020_v44 = vrot.slane %v1006_v39, %v1539_v11  ;;  %v764_v45 = vrot.slane %v493_v21, %v1537_v10  ;;  %v511_v46 = vcombine.high %v503_v36, %v503_v36 }
  0x76   : > { %v519_v47 = vrot.slane %v503_v36, %v1534_v8  ;;  %v1003_v48 = vrot.slane %v989_v18, %v1539_v11  ;;  %v768_v49 = vrot.slane %v495_v42, %v1537_v10  ;;  %v510_v51 = vrot.slane %v496_v38, %v1534_v8 }
  0x77   : > { %v1022_v50 = vcombine.low %v756_v41, %v760_v43  ;;  %v1021_v52 = vcombine.low %v1013_v40, %v1020_v44  ;;  %v533_v53 = vrot.slane %v511_v46, %v1534_v8 }
  0x78   : > { %v541_v54 = vcombine.high %v519_v47, %v519_v47  ;;  %v772_v55 = vrot.slane %v519_v47, %v1537_v10  ;;  %v1004_v56 = vcombine.low %v996_v22, %v1003_v48  ;;  %v1023_v57 = vcombine.low %v764_v45, %v768_v49 }
  0x79   : > { %v1030_v58 = vrot.slane %v1022_v50, %v1539_v11  ;;  %v512_v59 = vcombine.high %v510_v51, %v510_v51  ;;  %1101 = vst [vmem:[%s1598_s25 + $0xc0] sm:$0xff] %v1021_v52  ;;  %1231 = vst [vmem:[%s1598_s25 + $0xd0] sm:$0xff] %v1021_v52  ;;  %v543_v60 = vcombine.high %v533_v53, %v533_v53 }
  0x7a   : > { %v776_v61 = vrot.slane %v533_v53, %v1537_v10  ;;  %v780_v62 = vrot.slane %v541_v54, %v1537_v10  ;;  %v526_v63 = vrot.slane %v510_v51, %v1534_v8  ;;  %1100 = vst [vmem:[%s1598_s25 + $0xa8] sm:$0xff] %v1004_v56  ;;  %1230 = vst [vmem:[%s1598_s25 + $0xb8] sm:$0xff] %v1004_v56 }
  0x7b   : > { %v1037_v0 = vrot.slane %v1023_v57, %v1539_v11  ;;  %v540_v1 = vrot.slane %v512_v59, %v1534_v8  ;;  %v784_v2 = vrot.slane %v543_v60, %v1537_v10 }
  0x7c   : > { %v1039_v3 = vcombine.low %v772_v55, %v776_v61  ;;  %v542_v4 = vcombine.high %v526_v63, %v526_v63  ;;  %v788_v5 = vrot.slane %v526_v63, %v1537_v10 }
  0x7d   : > { %v1038_v6 = vcombine.low %v1030_v58, %v1037_v0  ;;  %v544_v7 = vcombine.high %v540_v1, %v540_v1  ;;  %v792_v9 = vrot.slane %v540_v1, %v1537_v10  ;;  %v1040_v12 = vcombine.low %v780_v62, %v784_v2 }
  0x7e   : > { %v1047_v14 = vrot.slane %v1039_v3, %v1539_v11  ;;  %v796_v15 = vrot.slane %v542_v4, %v1537_v10 }
  0x7f   : > { %1102 = vst [vmem:[%s1598_s25 + $0xc8] sm:$0xff] %v1038_v6  ;;  %1232 = vst [vmem:[%s1598_s25 + $0xd8] sm:$0xff] %v1038_v6  ;;  %v800_v8 = vrot.slane %v544_v7, %v1537_v10  ;;  %v1056_v16 = vcombine.low %v788_v5, %v792_v9  ;;  %v1054_v17 = vrot.slane %v1040_v12, %v1539_v11 }
  0x81   : > { %v1057_v19 = vcombine.low %v796_v15, %v800_v8  ;;  %v1064_v23 = vrot.slane %v1056_v16, %v1539_v11  ;;  %v1055_v24 = vcombine.low %v1047_v14, %v1054_v17 }
  0x83   : > { %v1071_v25 = vrot.slane %v1057_v19, %v1539_v11  ;;  %1103 = vst [vmem:[%s1598_s25 + $0xe0] sm:$0xff] %v1055_v24  ;;  %1233 = vst [vmem:[%s1598_s25 + $0xf0] sm:$0xff] %v1055_v24 }
  0x85   : > { %v1072_v10 = vcombine.low %v1064_v23, %v1071_v25 }
  0x87   : > { %1104 = vst [vmem:[%s1598_s25 + $0xe8] sm:$0xff] %v1072_v10  ;;  %1234 = vst [vmem:[%s1598_s25 + $0xf8] sm:$0xff] %v1072_v10 }
  0x88   : > { %1347 = shalt.err (!%p1344_p2)
}
  0x89   : > { %s1348_s14 = scalar_lea.hbm %s1756_s3, 4096  ;;  %s1352_s21 = scalar_lea.hbm %s1805_s1, 8192 }
  0x8a   : > { %p1349_p4 = scmp.ne.s32.totalorder %s1756_s3, %s1348_s14  ;;  %p1353_p9 = scmp.lt.u32.totalorder %s1756_s3, %s1805_s1 }
  0x8b   : > { %p1354_p1 = scmp.lt.u32.totalorder %s1352_s21, %s1348_s14  ;;  %p1356_p6 = scmp.lt.u32.totalorder %s1348_s14, %s1756_s3 }
  0x8c   : > { %p1350_p5 = pnand %p1349_p4, %p1812_p11 }
  0x8d   : > { %p1355_p3 = por %p1354_p1, %p1353_p9 }
  0x8e   : > { %p1351_p7 = pneg %p1350_p5 }
  0x8f   : > { %p1357_p12 = por %p1356_p6, %p1355_p3 }
  0x91   : > { %p1358_p13 = pnand %p1357_p12, %p1351_p7 }
  0x93   : > { %1361 = shalt.err (!%p1358_p13)
}
  0x94   : > { %s1408_s26 = smov 128   ;;  %s1409_s30 = smov 8  }
  0x95   : > { %1246 = dma.vmem_to_hbm [thread:$0]  (%p1812_p11), %s1758_s28, 4096, %s1756_s3, %s1123_s10, %s1408_s26, %s1408_s26, %s1409_s30  }
  0x96 PF: > { %s1152_s17 = sand.u32 1, %s1388_s6   ;;  %p1813_p8 = scmp.ne.s32.totalorder %s1810_s19, 0 }
  0x97   : > { %p1814_p10 = scmp.ge.s32.totalorder %s1400_s9, 2  ;;  %s1153_s25 = scalar_lea.sflag [#allocation4], %s1152_s17 }
  0x99   : > { %p1253_p0 = pnand %p1814_p10, %p1813_p8 }
  0x9b   : > { %1383 = dma.done.wait (!%p1253_p0), %s1153_s25, 4096  }
  0x9c   : > { %1385 = vsyncadd (!%p1253_p0), %s1153_s25, 4294963200  ;;  %p14_p2 = scmp.ge.s32.totalorder %s1445_s12, 4   ;;  %s1815_s6 = smov %s1392_s7 }
  0x9d   : > { %s1816_s7 = smov %s1396_s8  ;;  %s1817_s8 = smov %s1457_s15 }
  0x9e   : > { %s1818_s9 = smov %s1445_s12  ;;  %16 = sbr.rel (!%p14_p2) target bundleno = 5 (0x5), region = 70 }
  0xa5   :  { %1158 = vsyncpa [#allocation3], 1 }
  0xa6   :  { %1160 = vsyncpa [#allocation3 + $0x1], 1 }
  0xa7   :  { %1161 = vsyncpa [#allocation4], 1 }
  0xa8   :  { %1163 = vsyncpa [#allocation4 + $0x1], 1 }

</bundles_post_ra>
